<compile_context>
chip_gen: v7x
topology: tpu7x:2x2x1
jax: 0.10.0
libtpu: 0.0.40
codegen_flags: <defaults>
</compile_context>

<pallas_src>
import numpy as np
import jax
import jax.numpy as jnp
from jax import lax
from jax.experimental import pallas as pl
from jax.experimental.pallas import tpu as pltpu


def _round_up(x, m):
    return (x + m - 1) // m * m


def wisard_kernel(x_ref, w_ref, pram_ref, g_ref, out_ref, acc_ref):
    # x_ref:    (TB, Epad)     bf16  padded input bits (batch tile)
    # w_ref:    (Epad, TM)     bf16  fused permutation + bit-weight matrix tile
    # pram_ref: (n_words, TM)  i32   RAM packed along the address axis (32/word)
    # g_ref:    (TM, Cpad)     bf16  class-grouping matrix tile
    # out_ref:  (TB, Cpad)     i32   lane-dense per-class responses
    # acc_ref:  (TB, Cpad)     f32   accumulator across neuron tiles
    @pl.when(pl.program_id(1) == 0)
    def _():
        acc_ref[...] = jnp.zeros_like(acc_ref)

    # Addresses for every class at once (MXU; exact: bits x powers of two).
    addr = jnp.dot(x_ref[...], w_ref[...],
                   preferred_element_type=jnp.float32).astype(jnp.int32)   # (TB, TM)

    # Packed-bit RAM probe: hits[b, m] = bit (addr & 31) of word (addr >> 5).
    words = pram_ref[...]                                   # (n_words, TM) int32
    n_words = words.shape[0]
    word = jnp.broadcast_to(words[0:1, :], addr.shape)      # (TB, TM)
    if n_words > 1:
        widx = addr >> 5
        for w in range(1, n_words):                         # static, ceil(A/32)-1 iters
            word = jnp.where(widx == w, words[w:w + 1, :], word)
    bit = addr & 31
    hits = jnp.right_shift(word, bit) & 1                   # (TB, TM) 0/1 int32
    hits = hits.astype(jnp.float32).astype(jnp.bfloat16)    # exact (0/1)

    # Per-class sum as MXU contraction onto a lane-dense (TB, Cpad) block.
    acc_ref[...] += jnp.dot(hits, g_ref[...], preferred_element_type=jnp.float32)

    @pl.when(pl.program_id(1) == pl.num_programs(1) - 1)
    def _():
        out_ref[...] = acc_ref[...].astype(jnp.int32)


def wisard_forward(samples_bits, tuple_mapping, ram, tuple_size, entry_size):
    """samples_bits: (B, entry_size) int {0,1}. Returns (B, n_classes) int8."""
    n_classes, n_neurons, A = ram.shape
    E = n_neurons * tuple_size                  # total_entry_size
    B = samples_bits.shape[0]
    M = n_classes * n_neurons                   # fused neuron axis (all classes)

    # Lane-dense paddings.
    Cpad = _round_up(max(n_classes, 1), 128)
    Epad = _round_up(E, 128)                    # lane-dense x loads, fuller MXU K
    Mpad0 = _round_up(M, 128)
    n_words = (A + 31) // 32                    # packed RAM words per neuron

    # Batch tiling ("parallel"): aim for >= 2 tiles so both v7x TCs get work.
    B8 = _round_up(B, 8)
    if B8 <= 8:
        TB = 8
    else:
        TB = min(256, _round_up((B8 + 1) // 2, 8))
    Bpad = _round_up(B8, TB)
    nb = Bpad // TB

    # Neuron-axis ("arbitrary") tile: largest multiple of 128 whose
    # double-buffered footprint fits ~16 MiB (safe on 64 MiB v7x VMEM, well
    # under the 32 MiB scoped limit requested below).  TM == Mpad means W /
    # RAM / G are fetched once and stay resident for the whole grid (no
    # re-streaming across batch tiles).
    def footprint(tm):
        return (2 * (TB * Epad * 2 + Epad * tm * 2 + n_words * tm * 4
                     + tm * Cpad * 2 + TB * Cpad * 4)
                + TB * Cpad * 4)

    budget = 16 * 1024 * 1024
    TM = None
    for cand in (Mpad0, 2048, 1024, 512, 256, 128):
        if cand <= Mpad0 and footprint(cand) <= budget:
            TM = cand
            break
    if TM is None:
        TM = 128
    nm = pl.cdiv(Mpad0, TM)
    Mpad = nm * TM
    # TODO(synk): for very large Epad an extra K-tiling grid axis over E (with
    # accumulation of the address matmul) would be needed; not required here.

    # --- glue: fused W (Epad, Mpad): W[e, c*N+n] = 2^(ts-1-j) iff
    #           tuple_mapping[c, n*ts+j] == e.
    pos = tuple_mapping.reshape(n_classes, n_neurons, tuple_size).astype(jnp.int32)
    powers = (2.0 ** (tuple_size - 1 - jnp.arange(tuple_size))).astype(jnp.float32)
    col = (jnp.arange(n_classes)[:, None, None] * n_neurons
           + jnp.arange(n_neurons)[None, :, None])
    col = jnp.broadcast_to(col, pos.shape)
    vals = jnp.broadcast_to(powers[None, None, :], pos.shape)
    W = jnp.zeros((Epad, Mpad), jnp.float32).at[pos, col].set(vals).astype(jnp.bfloat16)

    # --- glue: packed RAM (n_words, Mpad) int32; bit (a & 31) of word (a >> 5)
    #           in column c*N+n holds ram[c, n, a] (0/1).
    ramT = jnp.transpose(ram.astype(jnp.uint32), (2, 0, 1)).reshape(A, M)
    ramT = jnp.pad(ramT, ((0, n_words * 32 - A), (0, Mpad - M)))
    bit_w = jnp.left_shift(jnp.uint32(1), jnp.arange(32, dtype=jnp.uint32))
    packed = jnp.sum(ramT.reshape(n_words, 32, Mpad) * bit_w[None, :, None],
                     axis=1, dtype=jnp.uint32)
    packed = lax.bitcast_convert_type(packed, jnp.int32)            # (n_words, Mpad)

    # --- glue: class-grouping matrix G (Mpad, Cpad).
    rows = jnp.arange(M)
    G = jnp.zeros((Mpad, Cpad), jnp.float32).at[rows, rows // n_neurons].set(1.0)
    G = G.astype(jnp.bfloat16)

    # --- glue: pad input bits (entry + lane + batch padding), cast to bf16.
    x = jnp.pad(samples_bits,
                ((0, Bpad - B), (0, Epad - entry_size))).astype(jnp.bfloat16)

    out = pl.pallas_call(
        wisard_kernel,
        out_shape=jax.ShapeDtypeStruct((Bpad, Cpad), jnp.int32),
        grid_spec=pltpu.PrefetchScalarGridSpec(
            num_scalar_prefetch=0,
            grid=(nb, nm),
            in_specs=[
                pl.BlockSpec((TB, Epad), lambda i, j: (i, 0)),     # x: resident over j
                pl.BlockSpec((Epad, TM), lambda i, j: (0, j)),     # W tile
                pl.BlockSpec((n_words, TM), lambda i, j: (0, j)),  # packed RAM tile
                pl.BlockSpec((TM, Cpad), lambda i, j: (j, 0)),     # G tile
            ],
            out_specs=pl.BlockSpec((TB, Cpad), lambda i, j: (i, 0)),
            scratch_shapes=[pltpu.VMEM((TB, Cpad), jnp.float32)],
        ),
        compiler_params=pltpu.CompilerParams(
            dimension_semantics=("parallel", "arbitrary"),
            vmem_limit_bytes=32 * 1024 * 1024),
    )(x, W, packed, G)

    # int8 cast matches the PyTorch output dtype; responses > 127 would wrap
    # (only possible if n_neurons > 127), exactly like torch.int8.
    return out[:B, :n_classes].astype(jnp.int8)


def wisard_ref(samples_bits, tuple_mapping, ram, tuple_size, entry_size):
    """Pure-JAX reference mirroring the PyTorch forward (bleach == 0)."""
    n_classes, n_neurons, A = ram.shape
    total_entry_size = n_neurons * tuple_size
    pad_bits = total_entry_size - entry_size
    if pad_bits > 0:
        samples_bits = jnp.pad(samples_bits, ((0, 0), (0, pad_bits)))
    B = samples_bits.shape[0]
    tidx = jnp.flip(jnp.arange(tuple_size))
    weights = (1 << tidx).astype(jnp.int32)
    resp = []
    for c in range(n_classes):
        mapped = samples_bits[:, tuple_mapping[c]]
        mapped = mapped.reshape(B, n_neurons, tuple_size)
        addr = jnp.sum(mapped * weights[None, None, :], axis=-1)
        hit = ram[c][jnp.arange(n_neurons)[None, :], addr]
        resp.append(jnp.sum(hit, axis=-1).astype(jnp.int8))
    return jnp.stack(resp, axis=1)


if __name__ == "__main__":
    # Module config (small, consistent with Wisard.__init__)
    entry_size = 62
    n_classes = 4
    tuple_size = 4
    n_neurons = entry_size // tuple_size + (entry_size % tuple_size > 0)   # 16
    total_entry_size = n_neurons * tuple_size                              # 64
    A = 1 << tuple_size                                                    # 16
    batch = 8

    key = jax.random.PRNGKey(0)
    k_map, k_ram, k_x = jax.random.split(key, 3)

    # tuple_mapping: one random permutation of total_entry_size per class
    map_keys = jax.random.split(k_map, n_classes)
    tuple_mapping = jnp.stack(
        [jax.random.permutation(map_keys[i], total_entry_size) for i in range(n_classes)]
    ).astype(jnp.int32)                                                    # (n_classes, E)

    # RAM contents (synthetic trained address sets): 1 if address present
    ram = jax.random.bernoulli(k_ram, 0.5, (n_classes, n_neurons, A)).astype(jnp.int32)

    # Binary input samples
    samples = jax.random.bernoulli(k_x, 0.5, (batch, entry_size)).astype(jnp.int32)

    out = wisard_forward(samples, tuple_mapping, ram, tuple_size, entry_size)
    out = jax.block_until_ready(out)

    ref = wisard_ref(samples, tuple_mapping, ram, tuple_size, entry_size)
    np.testing.assert_array_equal(np.asarray(out), np.asarray(ref))
    assert out.shape == (batch, n_classes) and out.dtype == jnp.int8

    print("KERNEL_OK")
</pallas_src>

<mosaic_0001>
module attributes {stable_mosaic.version = 11 : i64} {
  func.func @wisard_kernel(%arg0: i32, %arg1: i32, %arg2: memref<8x128xbf16, #tpu.memory_space<vmem>>, %arg3: memref<128x128xbf16, #tpu.memory_space<vmem>>, %arg4: memref<1x128xi32, #tpu.memory_space<vmem>>, %arg5: memref<128x128xbf16, #tpu.memory_space<vmem>>, %arg6: memref<8x128xi32, #tpu.memory_space<vmem>>, %arg7: memref<8x128xf32, #tpu.memory_space<vmem>>) attributes {dimension_semantics = [#tpu.dimension_semantics<parallel>, #tpu.dimension_semantics<arbitrary>], iteration_bounds = array<i64: 1, 1>, scalar_prefetch = 0 : i64, scratch_operands = 1 : i64, tpu.core_type = #tpu.core_type<tc>, window_params = [{transform_indices = @transform_0, window_bounds = array<i64: 8, 128>}, {transform_indices = @transform_1, window_bounds = array<i64: 128, 128>}, {transform_indices = @transform_2, window_bounds = array<i64: 1, 128>}, {transform_indices = @transform_3, window_bounds = array<i64: 128, 128>}, {transform_indices = @transform_4, window_bounds = array<i64: 8, 128>}]} {
    %c0_i32 = arith.constant 0 : i32
    %0 = arith.cmpi eq, %arg1, %c0_i32 : i32
    %1 = arith.extui %0 : i1 to i32
    %c0_i32_0 = arith.constant 0 : i32
    %2 = arith.cmpi ne, %1, %c0_i32_0 : i32
    scf.if %2 {
      %cst_15 = arith.constant 0.000000e+00 : f32
      %25 = vector.broadcast %cst_15 : f32 to vector<8x128xf32>
      %c0_16 = arith.constant 0 : index
      %c0_17 = arith.constant 0 : index
      %26 = vector.load %arg7[%c0_16, %c0_17] : memref<8x128xf32, #tpu.memory_space<vmem>>, vector<8x128xf32>
      tpu.vector_store %arg7[%c0_16, %c0_17], %25 {strides = array<i32>} : memref<8x128xf32, #tpu.memory_space<vmem>>, vector<8x128xf32>,
    } else {
    }
    %c0 = arith.constant 0 : index
    %c0_1 = arith.constant 0 : index
    %3 = vector.load %arg2[%c0, %c0_1] : memref<8x128xbf16, #tpu.memory_space<vmem>>, vector<8x128xbf16>
    %c0_2 = arith.constant 0 : index
    %c0_3 = arith.constant 0 : index
    %4 = vector.load %arg3[%c0_2, %c0_3] : memref<128x128xbf16, #tpu.memory_space<vmem>>, vector<128x128xbf16>
    %cst = arith.constant dense<0.000000e+00> : vector<8x128xf32>
    %5 = tpu.matmul %3, %4, %cst {dimension_numbers = #tpu.dot_dimension_numbers<[1], [0], [0], [1], [0, 0, 1, 1], [], []>} : vector<8x128xbf16>, vector<128x128xbf16>, vector<8x128xf32> -> vector<8x128xf32>
    %6 = arith.fptosi %5 : vector<8x128xf32> to vector<8x128xi32>
    %c0_4 = arith.constant 0 : index
    %c0_5 = arith.constant 0 : index
    %7 = vector.load %arg4[%c0_4, %c0_5] : memref<1x128xi32, #tpu.memory_space<vmem>>, vector<1x128xi32>
    %8 = vector.shape_cast %7 : vector<1x128xi32> to vector<1x128xi32>
    %9 = vector.broadcast %8 : vector<1x128xi32> to vector<8x128xi32>
    %c31_i32 = arith.constant 31 : i32
    %10 = vector.broadcast %c31_i32 : i32 to vector<8x128xi32>
    %11 = arith.andi %6, %10 : vector<8x128xi32>
    %12 = arith.shrsi %9, %11 : vector<8x128xi32>
    %c1_i32 = arith.constant 1 : i32
    %13 = vector.broadcast %c1_i32 : i32 to vector<8x128xi32>
    %14 = arith.andi %12, %13 : vector<8x128xi32>
    %15 = arith.sitofp %14 : vector<8x128xi32> to vector<8x128xf32>
    %16 = arith.truncf %15 : vector<8x128xf32> to vector<8x128xbf16>
    %c0_6 = arith.constant 0 : index
    %c0_7 = arith.constant 0 : index
    %17 = vector.load %arg7[%c0_6, %c0_7] : memref<8x128xf32, #tpu.memory_space<vmem>>, vector<8x128xf32>
    %c0_8 = arith.constant 0 : index
    %c0_9 = arith.constant 0 : index
    %18 = vector.load %arg5[%c0_8, %c0_9] : memref<128x128xbf16, #tpu.memory_space<vmem>>, vector<128x128xbf16>
    %cst_10 = arith.constant dense<0.000000e+00> : vector<8x128xf32>
    %19 = tpu.matmul %16, %18, %cst_10 {dimension_numbers = #tpu.dot_dimension_numbers<[1], [0], [0], [1], [0, 0, 1, 1], [], []>} : vector<8x128xbf16>, vector<128x128xbf16>, vector<8x128xf32> -> vector<8x128xf32>
    %20 = arith.addf %17, %19 : vector<8x128xf32>
    %c0_11 = arith.constant 0 : index
    %c0_12 = arith.constant 0 : index
    %21 = vector.load %arg7[%c0_11, %c0_12] : memref<8x128xf32, #tpu.memory_space<vmem>>, vector<8x128xf32>
    tpu.vector_store %arg7[%c0_11, %c0_12], %20 {strides = array<i32>} : memref<8x128xf32, #tpu.memory_space<vmem>>, vector<8x128xf32>,
    %c0_i32_13 = arith.constant 0 : i32
    %22 = arith.cmpi eq, %arg1, %c0_i32_13 : i32
    %23 = arith.extui %22 : i1 to i32
    %c0_i32_14 = arith.constant 0 : i32
    %24 = arith.cmpi ne, %23, %c0_i32_14 : i32
    scf.if %24 {
      %c0_15 = arith.constant 0 : index
      %c0_16 = arith.constant 0 : index
      %25 = vector.load %arg7[%c0_15, %c0_16] : memref<8x128xf32, #tpu.memory_space<vmem>>, vector<8x128xf32>
      %26 = arith.fptosi %25 : vector<8x128xf32> to vector<8x128xi32>
      %c0_17 = arith.constant 0 : index
      %c0_18 = arith.constant 0 : index
      %27 = vector.load %arg6[%c0_17, %c0_18] : memref<8x128xi32, #tpu.memory_space<vmem>>, vector<8x128xi32>
      tpu.vector_store %arg6[%c0_17, %c0_18], %26 {strides = array<i32>} : memref<8x128xi32, #tpu.memory_space<vmem>>, vector<8x128xi32>,
    } else {
    }
    return
  }
  func.func @transform_0(%arg0: i32, %arg1: i32) -> (i32, i32) {
    %c0_i32 = arith.constant 0 : i32
    %c0_i32_0 = arith.constant 0 : i32
    return %arg0, %c0_i32 : i32, i32
  }
  func.func @transform_1(%arg0: i32, %arg1: i32) -> (i32, i32) {
    %c0_i32 = arith.constant 0 : i32
    %c0_i32_0 = arith.constant 0 : i32
    return %c0_i32, %arg1 : i32, i32
  }
  func.func @transform_2(%arg0: i32, %arg1: i32) -> (i32, i32) {
    %c0_i32 = arith.constant 0 : i32
    %c0_i32_0 = arith.constant 0 : i32
    return %c0_i32, %arg1 : i32, i32
  }
  func.func @transform_3(%arg0: i32, %arg1: i32) -> (i32, i32) {
    %c0_i32 = arith.constant 0 : i32
    %c0_i32_0 = arith.constant 0 : i32
    return %arg1, %c0_i32 : i32, i32
  }
  func.func @transform_4(%arg0: i32, %arg1: i32) -> (i32, i32) {
    %c0_i32 = arith.constant 0 : i32
    %c0_i32_0 = arith.constant 0 : i32
    return %arg0, %c0_i32 : i32, i32
  }
}

</mosaic_0001>

<bundles_post_ra>
// kernel: tpu_custom_call.1
= control target key start
LH: loop header
LB: loop body
LE: loop exit
PB: predicated region body
PF: predicated region fallthrough
CT: control target
= control target key end

     0   :  { %9 = vsyncpa [#allocation4], 0  ;;  %s595_s0 = inlined_call_operand.hbm [shape: bf16[8,128], index: 0, kind: input, shape index: {}]   ;;  %s596_s1 = inlined_call_operand.hbm [shape: bf16[128,128], index: 1, kind: input, shape index: {}]   ;;  %s597_s2 = inlined_call_operand.vmem [shape: s32[1,128], index: 2, kind: input, shape index: {}]   ;;  %s598_s3 = inlined_call_operand.hbm [shape: bf16[128,128], index: 3, kind: input, shape index: {}]   ;;  %s599_s4 = inlined_call_operand.hbm [shape: s32[8,128], index: 4, kind: output, shape index: {}]  }
   0x1   :  { %10 = vsyncpa [#allocation7], 0 }
   0x2   :  { %11 = vsyncpa [#allocation5], 0  ;;  %s505_s15 = smov [#allocation6]   ;;  %s411_s19 = scalar_lea.hbm %s596_s1, 1024 }
   0x3   :  { %s27_s16 = sshll.u32 %s505_s15, 4  ;;  %p412_p0 = scmp.ne.s32.totalorder %s596_s1, %s411_s19  ;;  %s28_s16 = int_to_ptr.vmem [resolvable:$true] %s27_s16 }
   0x4   :  { %p415_p1 = scmp.lt.u32.totalorder %s411_s19, %s596_s1 }
   0x6   :  { %p417_p2 = pnand %p415_p1, %p412_p0 }
   0x8   :  { %420 = shalt.err (!%p417_p2)
}
   0x9   :  { %s421_s24 = scalar_lea.vmem %s28_s16, 1024  ;;  %p426_p4 = scmp.lt.s32.totalorder %s28_s16, %s28_s16 }
   0xa   :  { %p422_p3 = scmp.ne.s32.totalorder %s28_s16, %s421_s24  ;;  %p427_p5 = scmp.lt.s32.totalorder %s421_s24, %s421_s24 }
   0xc   :  { %p428_p6 = por %p427_p5, %p426_p4 }
   0xe   :  { %p429_p7 = pnand %p428_p6, %p422_p3 }
  0x10   :  { %432 = shalt.err (!%p429_p7)
}
  0x11   :  { %s506_s25 = smov 64   ;;  %s507_s26 = smov 4  }
  0x12   :  { %33 = dma.hbm_to_vmem [thread:$0]  %s596_s1, 1024, %s28_s16, [#allocation7], %s506_s25, %s506_s25, %s507_s26  }
  0x13   :  { %s508_s29 = smov [#allocation3]   ;;  %s509_s5 = smov [#allocation8]  }
  0x14   :  { %s18_s30 = sshll.u32 %s508_s29, 4  ;;  %s41_s6 = sshll.u32 %s509_s5, 4  ;;  %s19_s30 = int_to_ptr.vmem [resolvable:$true] %s18_s30  ;;  %s42_s6 = int_to_ptr.vmem [resolvable:$true] %s41_s6 }
  0x15   :  { %s433_s9 = scalar_lea.hbm %s595_s0, 64 }
  0x16   :  { %p434_p8 = scmp.ne.s32.totalorder %s595_s0, %s433_s9  ;;  %p437_p9 = scmp.lt.u32.totalorder %s433_s9, %s595_s0 }
  0x18   :  { %p439_p10 = pnand %p437_p9, %p434_p8 }
  0x1a   :  { %442 = shalt.err (!%p439_p10)
}
  0x1b   :  { %s443_s1 = scalar_lea.vmem %s19_s30, 64  ;;  %p448_p12 = scmp.lt.s32.totalorder %s19_s30, %s19_s30 }
  0x1c   :  { %p444_p11 = scmp.ne.s32.totalorder %s19_s30, %s443_s1  ;;  %p449_p13 = scmp.lt.s32.totalorder %s443_s1, %s443_s1 }
  0x1e   :  { %p450_p0 = por %p449_p13, %p448_p12 }
  0x20   :  { %p451_p1 = pnand %p450_p0, %p444_p11 }
  0x22   :  { %454 = shalt.err (!%p451_p1)
}
  0x23   :  { %21 = dma.hbm_to_vmem [thread:$0]  %s595_s0, 64, %s19_s30, [#allocation4]  }
  0x24   :  { %s455_s18 = scalar_lea.hbm %s598_s3, 1024 }
  0x25   :  { %p456_p2 = scmp.ne.s32.totalorder %s598_s3, %s455_s18  ;;  %p459_p3 = scmp.lt.u32.totalorder %s455_s18, %s598_s3 }
  0x27   :  { %p461_p4 = pnand %p459_p3, %p456_p2 }
  0x29   :  { %464 = shalt.err (!%p461_p4)
}
  0x2a   :  { %s465_s23 = scalar_lea.vmem %s42_s6, 1024  ;;  %p470_p6 = scmp.lt.s32.totalorder %s42_s6, %s42_s6 }
  0x2b   :  { %p466_p5 = scmp.ne.s32.totalorder %s42_s6, %s465_s23  ;;  %p471_p7 = scmp.lt.s32.totalorder %s465_s23, %s465_s23 }
  0x2d   :  { %p472_p8 = por %p471_p7, %p470_p6 }
  0x2f   :  { %p473_p9 = pnand %p472_p8, %p466_p5 }
  0x31   :  { %476 = shalt.err (!%p473_p9)
}
  0x32   :  { %47 = dma.hbm_to_vmem [thread:$0]  %s598_s3, 1024, %s42_s6, [#allocation7], %s506_s25, %s506_s25, %s507_s26  }
  0x33   :  { %499 = dma.done.wait [#allocation4], 64  }
  0x34   :  { %500 = vsyncadd [#allocation4], 4294967232 }
  0x35   :  { %501 = dma.done.wait [#allocation7], 2048  }
  0x36   :  { %502 = vsyncadd [#allocation7], 4294965248  ;;  %v510_v0 = vmov 0.0   ;;  %vm511_vm0 = vmmov 0   ;;  %v395_v1 = vld [vmem:[#allocation6] sm:$0xff]   ;;  %v396_v2 = vld [vmem:[#allocation6 + $0x8] sm:$0xff]  }
  0x37   :  { %343 = vmatprep.subr.bf16.mxu0 %v510_v0  ;;  %359 = vmatprep.mubr.msk.bf16.mxu0 %vm511_vm0, %v510_v0  ;;  %v397_v3 = vld [vmem:[#allocation6 + $0x10] sm:$0xff]   ;;  %v403_v4 = vld [vmem:[#allocation8] sm:$0xff]   ;;  %v398_v5 = vld [vmem:[#allocation6 + $0x18] sm:$0xff]   ;;  %s512_s26 = smov [#allocation9]  }
  0x38   :  { %363 = vmatprep.subr.bf16.mxu1 %v510_v0  ;;  %379 = vmatprep.mubr.msk.bf16.mxu1 %vm511_vm0, %v510_v0  ;;  %v404_v6 = vld [vmem:[#allocation8 + $0x8] sm:$0xff]   ;;  %v399_v7 = vld [vmem:[#allocation6 + $0x20] sm:$0xff]   ;;  %v405_v8 = vld [vmem:[#allocation8 + $0x10] sm:$0xff]   ;;  %s298_s27 = sshll.u32 %s512_s26, 4  ;;  %s299_s27 = int_to_ptr.vmem [resolvable:$true] %s298_s27 }
  0x39   :  { %344 = vmatpush3.bf16.msra.mxu0 %v395_v1  ;;  %364 = vmatpush3.bf16.msra.mxu1 %v403_v4  ;;  %v400_v9 = vld [vmem:[#allocation6 + $0x28] sm:$0xff]   ;;  %v406_v10 = vld [vmem:[#allocation8 + $0x18] sm:$0xff]   ;;  %v401_v11 = vld [vmem:[#allocation6 + $0x30] sm:$0xff]   ;;  %s477_s28 = scalar_lea.vmem %s299_s27, 128  ;;  %p482_p11 = scmp.lt.s32.totalorder %s299_s27, %s299_s27 }
  0x3a   :  { %345 = vmatprep.subr.bf16.mxu0 %v510_v0  ;;  %365 = vmatprep.subr.bf16.mxu1 %v510_v0  ;;  %v402_v12 = vld [vmem:[#allocation6 + $0x38] sm:$0xff]   ;;  %v407_v14 = vld [vmem:[#allocation8 + $0x20] sm:$0xff]   ;;  %v408_v15 = vld [vmem:[#allocation8 + $0x28] sm:$0xff]   ;;  %p478_p10 = scmp.ne.s32.totalorder %s299_s27, %s477_s28  ;;  %p483_p12 = scmp.lt.s32.totalorder %s477_s28, %s477_s28 }
  0x3b   :  { %v63_v13 = vld [vmem:[#allocation3] sm:$0xf]  ;;  %v409_v16 = vld [vmem:[#allocation8 + $0x30] sm:$0xff]  }
  0x3c   :  { %v410_v17 = vld [vmem:[#allocation8 + $0x38] sm:$0xff]   ;;  %p484_p13 = por %p483_p12, %p482_p11 }
  0x3d   :  { %346 = vmatpush3.bf16.msra.mxu0 %v396_v2  ;;  %366 = vmatpush3.bf16.msra.mxu1 %v404_v6  ;;  %v316_v24 = vld [vmem:[%s597_s2] ss:$0 sm:$0xff] }
  0x3e   :  { %347 = vmatprep.subr.bf16.mxu0 %v510_v0  ;;  %367 = vmatprep.subr.bf16.mxu1 %v510_v0  ;;  %p485_p0 = pnand %p484_p13, %p478_p10 }
  0x41   :  { %348 = vmatpush3.bf16.msra.mxu0 %v397_v3  ;;  %368 = vmatpush3.bf16.msra.mxu1 %v405_v8 }
  0x42   :  { %349 = vmatprep.subr.bf16.mxu0 %v510_v0  ;;  %369 = vmatprep.subr.bf16.mxu1 %v510_v0 }
  0x45   :  { %350 = vmatpush3.bf16.msra.mxu0 %v398_v5  ;;  %370 = vmatpush3.bf16.msra.mxu1 %v406_v10 }
  0x46   :  { %351 = vmatprep.subr.bf16.mxu0 %v510_v0  ;;  %371 = vmatprep.subr.bf16.mxu1 %v510_v0 }
  0x49   :  { %352 = vmatpush3.bf16.msra.mxu0 %v399_v7  ;;  %372 = vmatpush3.bf16.msra.mxu1 %v407_v14 }
  0x4a   :  { %353 = vmatprep.subr.bf16.mxu0 %v510_v0  ;;  %373 = vmatprep.subr.bf16.mxu1 %v510_v0 }
  0x4d   :  { %354 = vmatpush3.bf16.msra.mxu0 %v400_v9  ;;  %374 = vmatpush3.bf16.msra.mxu1 %v408_v15 }
  0x4e   :  { %355 = vmatprep.subr.bf16.mxu0 %v510_v0  ;;  %375 = vmatprep.subr.bf16.mxu1 %v510_v0 }
  0x51   :  { %356 = vmatpush3.bf16.msra.mxu0 %v401_v11  ;;  %376 = vmatpush3.bf16.msra.mxu1 %v409_v16 }
  0x52   :  { %357 = vmatprep.subr.bf16.mxu0 %v510_v0  ;;  %377 = vmatprep.subr.bf16.mxu1 %v510_v0 }
  0x55   :  { %358 = vmatpush3.bf16.msra.mxu0 %v402_v12  ;;  %378 = vmatpush3.bf16.msra.mxu1 %v410_v17 }
  0x58   :  { %360 = vmatmul.mubr.bf16.vlgmr.msra.gmra.mrb[0].mxu0 %v63_v13 }
 0x12b   :  { %v162_v18 = vpop.f32.mrb[0].mxu0 }
 0x12c   :  { %v383_v19 = vtrunc.f32 %v162_v18  ;;  %v361_v20 = vpop.f32.mrb[1].mxu0 }
 0x12d   :  { %v165_v21 = vpop.f32.mrb[2].mxu0 }
 0x12e   :  { %v384_v22 = vcvt.f32.s32 %v383_v19  ;;  %v362_v23 = vpop.f32.mrb[3].mxu0 }
 0x130   :  { %v174_v25 = vand.u32 31, %v384_v22 }
 0x132   :  { %v175_v26 = vshra.s32 %v316_v24, %v174_v25 }
 0x134   :  { %v176_v27 = vand.u32 1, %v175_v26 }
 0x136   :  { %v177_v28 = vcvt.s32.f32 %v176_v27 }
 0x138   :  { %v178_v29 = vpack.c.bf16 %v177_v28, %v177_v28 }
 0x13a   :  { %380 = vmatmul.mubr.bf16.vlgmr.msra.gmra.mrb[0].mxu1 %v178_v29 }
 0x20d   :  { %v278_v30 = vpop.f32.mrb[0].mxu1 }
 0x20e   :  { %v385_v31 = vtrunc.f32 %v278_v30  ;;  %v381_v32 = vpop.f32.mrb[1].mxu1 }
 0x20f   :  { %v281_v33 = vpop.f32.mrb[2].mxu1 }
 0x210   :  { %v386_v34 = vcvt.f32.s32 %v385_v31  ;;  %v382_v35 = vpop.f32.mrb[3].mxu1 }
 0x212   :  { %291 = vst [vmem:[#allocation9] sm:$0xff] %v386_v34 }
 0x213   :  { %488 = shalt.err (!%p485_p0)
}
 0x214   :  { %s489_s30 = scalar_lea.hbm %s599_s4, 128 }
 0x215   :  { %p490_p1 = scmp.ne.s32.totalorder %s599_s4, %s489_s30  ;;  %p493_p2 = scmp.lt.u32.totalorder %s489_s30, %s599_s4 }
 0x217   :  { %p495_p3 = pnand %p493_p2, %p490_p1 }
 0x219   :  { %498 = shalt.err (!%p495_p3)
}
 0x21a   :  { %301 = dma.vmem_to_hbm [thread:$0]  %s299_s27, 128, %s599_s4, [#allocation5]  }
 0x21b   :  { %503 = dma.done.wait [#allocation5], 128  }
 0x21c   :  { %504 = vsyncadd [#allocation5], 4294967168 }
 0x21d   :  { %305 = vsyncpa [#allocation4], 1 }
 0x21e   :  { %306 = vsyncpa [#allocation7], 1 }
 0x21f   :  { %307 = vsyncpa [#allocation5], 1 }

</bundles_post_ra>
